<compile_context>
chip_gen: v6e
topology: v6e:2x2x1
jax: 0.10.0
libtpu: 0.0.40
codegen_flags: <defaults>
</compile_context>

<pallas_src>
import jax
import jax.numpy as jnp
from jax.experimental import pallas as pl
from jax.experimental.pallas import tpu as pltpu  # noqa: F401  (TPU backend)


def _addmm_kernel(bias_ref, x_ref, w_ref, out_ref):
    # MXU matmul with f32 accumulation + one VPU broadcast add.
    acc = jnp.dot(x_ref[...], w_ref[...], preferred_element_type=jnp.float32)
    # bias is (1, N), acc is (M, N): broadcast add; out is already f32 → no cast.
    out_ref[...] = bias_ref[...] + acc


def addmm_cat(x1, x2, w):
    """out = cat([x1 + x2 @ w], axis=-1)  (cat of a single tensor == identity)."""
    M, K = x2.shape
    K2, N = w.shape
    assert K == K2
    assert x1.shape == (1, N)

    flops = 2 * M * K * N
    bytes_accessed = 4 * (x1.size + x2.size + w.size + M * N)

    return pl.pallas_call(
        _addmm_kernel,
        out_shape=jax.ShapeDtypeStruct((M, N), jnp.float32),
        # Empty grid: one kernel invocation, whole arrays as blocks
        # (block_shape == full array dims satisfies the (8,128) rule).
        in_specs=[
            pl.BlockSpec((1, N), lambda: (0, 0)),  # bias x1 (1, N)
            pl.BlockSpec((M, K), lambda: (0, 0)),  # x2      (M, K)
            pl.BlockSpec((K, N), lambda: (0, 0)),  # W       (K, N)
        ],
        out_specs=pl.BlockSpec((M, N), lambda: (0, 0)),
        cost_estimate=pl.CostEstimate(
            flops=flops, transcendentals=0, bytes_accessed=bytes_accessed
        ),
    )(x1, x2, w)


if __name__ == "__main__":
    key = jax.random.PRNGKey(0)
    k_x1, k_x2, k_w, k_unused = jax.random.split(key, 4)

    M, K, N = 6, 10, 6
    # x1: bias, broadcast over rows of the (M, N) matmul result.
    x1 = jax.random.normal(k_x1, (1, N), dtype=jnp.float32)
    # x2: left matmul operand (matches torch.randn(6, 10)).
    x2 = jax.random.normal(k_x2, (M, K), dtype=jnp.float32)
    # W: deterministic stand-in for torch.rand(10, 6).
    w = jax.random.uniform(k_w, (K, N), dtype=jnp.float32)
    # Stray torch.rand(6, 10) from the original call — generated, unused.
    _unused = jax.random.uniform(k_unused, (M, K), dtype=jnp.float32)

    out = addmm_cat(x1, x2, w)
    out = jax.block_until_ready(out)

    # Sanity check against plain-JAX reference.
    ref = x1 + x2 @ w
    assert out.shape == (M, N)
    assert jnp.allclose(out, ref, atol=1e-5, rtol=1e-5)

    print("KERNEL_OK")
</pallas_src>

<mosaic_0001>
module attributes {stable_mosaic.version = 11 : i64} {
  func.func @_addmm_kernel(%arg0: memref<1x6xf32, #tpu.memory_space<vmem>>, %arg1: memref<6x10xf32, #tpu.memory_space<vmem>>, %arg2: memref<10x6xf32, #tpu.memory_space<vmem>>, %arg3: memref<6x6xf32, #tpu.memory_space<vmem>>) attributes {dimension_semantics = [], scalar_prefetch = 0 : i64, scratch_operands = 0 : i64, tpu.core_type = #tpu.core_type<tc>} {
    %c0 = arith.constant 0 : index
    %c0_0 = arith.constant 0 : index
    %0 = vector.load %arg1[%c0, %c0_0] : memref<6x10xf32, #tpu.memory_space<vmem>>, vector<6x10xf32>
    %c0_1 = arith.constant 0 : index
    %c0_2 = arith.constant 0 : index
    %1 = vector.load %arg2[%c0_1, %c0_2] : memref<10x6xf32, #tpu.memory_space<vmem>>, vector<10x6xf32>
    %cst = arith.constant dense<0.000000e+00> : vector<6x6xf32>
    %2 = tpu.matmul %0, %1, %cst {dimension_numbers = #tpu.dot_dimension_numbers<[1], [0], [0], [1], [0, 0, 1, 1], [], []>} : vector<6x10xf32>, vector<10x6xf32>, vector<6x6xf32> -> vector<6x6xf32>
    %c0_3 = arith.constant 0 : index
    %c0_4 = arith.constant 0 : index
    %3 = vector.load %arg0[%c0_3, %c0_4] : memref<1x6xf32, #tpu.memory_space<vmem>>, vector<1x6xf32>
    %4 = vector.broadcast %3 : vector<1x6xf32> to vector<6x6xf32>
    %5 = arith.addf %4, %2 : vector<6x6xf32>
    %c0_5 = arith.constant 0 : index
    %c0_6 = arith.constant 0 : index
    %6 = vector.load %arg3[%c0_5, %c0_6] : memref<6x6xf32, #tpu.memory_space<vmem>>, vector<6x6xf32>
    tpu.vector_store %arg3[%c0_5, %c0_6], %5 {strides = array<i32>} : memref<6x6xf32, #tpu.memory_space<vmem>>, vector<6x6xf32>,
    return
  }
}

</mosaic_0001>

<bundles_post_ra>
// kernel: tpu_custom_call.1
= control target key start
LH: loop header
LB: loop body
LE: loop exit
PB: predicated region body
PF: predicated region fallthrough
CT: control target
= control target key end

     0   :  { %vm22_vm0 = vcmask 1041408   ;;  %v158_v1 = vmov 0.0   ;;  %vm159_vm1 = vmmov 0   ;;  %s196_s0 = inlined_call_operand.vmem [shape: f32[1,6], index: 0, kind: input, shape index: {}]   ;;  %s197_s1 = inlined_call_operand.vmem [shape: f32[6,10], index: 1, kind: input, shape index: {}]   ;;  %s198_s2 = inlined_call_operand.vmem [shape: f32[10,6], index: 2, kind: input, shape index: {}]   ;;  %s199_s3 = inlined_call_operand.hbm [shape: f32[6,6], index: 3, kind: output, shape index: {}]  }
   0x1   :  { %v17_v0 = vld [vmem:[%s198_s2 + $0x8] sm:$0x3]  ;;  %126 = vmatprep.subr.mxu0 %v158_v1  ;;  %v16_v2 = vld [vmem:[%s198_s2] sm:$0xff]  ;;  %130 = vmatprep.mubr.msk.f32.mxu0 %vm159_vm1, %v158_v1 }
   0x2   :  { %8 = vsyncpa [#allocation3], 0  ;;  %127 = vmatpush3.msk.msra.mxu0 %vm22_vm0, %v17_v0  ;;  %v15_v3 = vld [vmem:[%s197_s1] sm:$0x3f]  ;;  %vm18_vm2 = vcmask 80896   ;;  %s160_s20 = smov [#allocation2]  }
   0x3   :  { %128 = vmatprep.subr.mxu0 %v158_v1  ;;  %v122_v4 = vld [vmem:[%s196_s0] ss:$0 sm:$0xff]  ;;  %s112_s21 = sshll.u32 %s160_s20, 4  ;;  %vm104_vm3 = vcmask 46080   ;;  %s113_s21 = int_to_ptr.vmem [resolvable:$true] %s112_s21 }
   0x4   :  { %129 = vmatpush3.msra.mxu0 %v16_v2  ;;  %s136_s2 = scalar_lea.vmem %s113_s21, 128  ;;  %p141_p1 = scmp.lt.s32.totalorder %s113_s21, %s113_s21 }
   0x5   :  { %131 = vmatmul.mubr.msk.f32.vlgmr.msra.gmra.mxu0 %vm18_vm2, %v15_v3  ;;  %p137_p0 = scmp.ne.s32.totalorder %s113_s21, %s136_s2  ;;  %p142_p2 = scmp.lt.s32.totalorder %s136_s2, %s136_s2 }
   0x7   :  { %p143_p3 = por %p142_p2, %p141_p1 }
   0x9   :  { %p144_p4 = pnand %p143_p3, %p137_p0 }
  0xc5   :  { %v92_v5 = vpop.f32.mrf.mxu0 }
  0xc6   :  { %v103_v6 = vadd.f32 %v122_v4, %v92_v5 }
  0xc7   :  { %v132_v7 = vpop.f32.mrf.mxu0 }
  0xc8   :  { %105 = vst.msk [vmem:[#allocation2] sm:$0x3f] %vm104_vm3, %v103_v6 }
  0xc9   :  { %147 = shalt.err (!%p144_p4)
}
  0xca   :  { %115 = dma.vmem_to_hbm [thread:$0]  %s113_s21, 128, %s199_s3, [#allocation3]  }
  0xcb   :  { %156 = dma.done.wait [#allocation3], 128  }
  0xcc   :  { %157 = vsyncadd [#allocation3], 4294967168 }
  0xcd   :  { %119 = vsyncpa [#allocation3], 1 }

</bundles_post_ra>
